<compile_context>
chip_gen: v6e
topology: v6e:2x2x1
jax: 0.10.0
libtpu: 0.0.40
codegen_flags: <defaults>
</compile_context>

<pallas_src>
import functools

import jax
import jax.numpy as jnp
from jax import lax
from jax.experimental import pallas as pl
from jax.experimental.pallas import tpu as pltpu


def _head_kernel(x_ref, w_ref, o_ref, *, head_size):
    # x_ref: (Bb*T, C) bf16 rows for the current batch block
    # w_ref: (C, 3*Hp) bf16 fused [K | Q | V] projection weights
    # o_ref: (Bb, T, Hp) output block (lane-dense, Hp multiple of 128)
    Bb, T, Hp = o_ref.shape
    rows, C = x_ref.shape

    # Fused K/Q/V projection: one (Bb*T, C) @ (C, 3*Hp) MXU call,
    # bf16 operands, f32 accumulation.
    kqv = jnp.dot(x_ref[...], w_ref[...],
                  preferred_element_type=jnp.float32)        # (Bb*T, 3*Hp) f32
    kqv = kqv.reshape(Bb, T, 3 * Hp)                          # trivial split (T % 8 == 0)
    k = kqv[:, :, :Hp]
    q = kqv[:, :, Hp:2 * Hp]
    v = kqv[:, :, 2 * Hp:]

    # Attention scores: contract over the head dim without materializing k^T.
    scale = jnp.float32(head_size ** -0.5)
    s = jnp.einsum("bqd,bkd->bqk", q, k,
                   preferred_element_type=jnp.float32) * scale  # (Bb, T, T)

    # Causal (tril) mask; diagonal is always unmasked so no row is fully
    # masked.  Large finite negative instead of -inf (NaN-safe).
    row = lax.broadcasted_iota(jnp.int32, (T, T), 0)
    col = lax.broadcasted_iota(jnp.int32, (T, T), 1)
    s = jnp.where((col <= row)[None, :, :], s, jnp.float32(-1e30))

    # Softmax in f32; the divide is deferred to an EUP reciprocal after attn@v.
    m = jnp.max(s, axis=-1, keepdims=True)
    p = jnp.exp(s - m)
    l = jnp.sum(p, axis=-1, keepdims=True)                    # (Bb, T, 1), >= 1

    # (dropout on attention weights: identity in eval mode)

    o = jnp.einsum("bqk,bkd->bqd",
                   p.astype(jnp.bfloat16), v.astype(jnp.bfloat16),
                   preferred_element_type=jnp.float32)        # (Bb, T, Hp)
    o = o * pl.reciprocal(l, approx=True)
    o_ref[...] = o.astype(o_ref.dtype)


def _pick_batch_block(B, T, target_rows=512):
    """Largest divisor of B with roughly target_rows rows per grid step."""
    if T % 8 != 0:
        return B
    bb = max(1, min(B, target_rows // T))
    while B % bb != 0:
        bb -= 1
    return bb


def head_forward(embed, wk, wq, wv, *, batch_block=None):
    """embed: (B, T, C) float32; wk/wq/wv: (C, H) float32 -> (B, T, H)."""
    B, T, C = embed.shape
    H = wk.shape[1]
    assert wq.shape == (C, H) and wv.shape == (C, H)

    # Pad head dim to a full lane width (>=128) for lane-dense stores and a
    # full MXU N dimension; fuse K/Q/V into one weight; bf16 MXU operands.
    Hp = ((max(H, 128) + 127) // 128) * 128

    def pad_w(w):
        return jnp.pad(w, ((0, 0), (0, Hp - H)))

    w_kqv = jnp.concatenate([pad_w(wk), pad_w(wq), pad_w(wv)],
                            axis=1).astype(jnp.bfloat16)      # (C, 3*Hp)
    x2d = embed.reshape(B * T, C).astype(jnp.bfloat16)        # (B*T, C)

    Bb = batch_block if batch_block is not None else _pick_batch_block(B, T)
    assert B % Bb == 0
    n_blocks = B // Bb

    kernel = functools.partial(_head_kernel, head_size=H)

    out_padded = pl.pallas_call(
        kernel,
        out_shape=jax.ShapeDtypeStruct((B, T, Hp), embed.dtype),
        grid_spec=pltpu.PrefetchScalarGridSpec(
            num_scalar_prefetch=0,
            grid=(n_blocks,),
            in_specs=[
                pl.BlockSpec((Bb * T, C), lambda b: (b, 0)),
                pl.BlockSpec((C, 3 * Hp), lambda b: (0, 0)),
            ],
            out_specs=pl.BlockSpec((Bb, T, Hp), lambda b: (b, 0, 0)),
        ),
        compiler_params=pltpu.CompilerParams(
            dimension_semantics=("parallel",),
        ),
    )(x2d, w_kqv)

    # Drop the zero-padded head columns.
    return out_padded[:, :, :H]


def head_reference(embed, wk, wq, wv):
    """Pure-JAX reference reproducing the PyTorch forward (eval mode)."""
    k = embed @ wk
    q = embed @ wq
    v = embed @ wv
    B, T, H = k.shape
    w = (q @ jnp.swapaxes(k, -1, -2)) * (H ** -0.5)
    mask = jnp.tril(jnp.ones((T, T), dtype=bool))
    w = jnp.where(mask, w, -jnp.inf)
    w = jax.nn.softmax(w, axis=-1)
    return w @ v


if __name__ == "__main__":
    # Small shapes consistent with the module's forward:
    # batch=2, seq=8 (<= block_size=256), n_embed=32, head_size=16
    B, T, C, H = 2, 8, 32, 16

    key = jax.random.PRNGKey(0)
    k_x, k_wk, k_wq, k_wv = jax.random.split(key, 4)

    embed = jax.random.normal(k_x, (B, T, C), dtype=jnp.float32)
    # Deterministic "Linear(bias=False)" weights, stored transposed as (C, H).
    bound = 1.0 / (C ** 0.5)
    wk = jax.random.uniform(k_wk, (C, H), jnp.float32, -bound, bound)
    wq = jax.random.uniform(k_wq, (C, H), jnp.float32, -bound, bound)
    wv = jax.random.uniform(k_wv, (C, H), jnp.float32, -bound, bound)

    out = head_forward(embed, wk, wq, wv)
    out = jax.block_until_ready(out)

    ref = head_reference(embed, wk, wq, wv)
    assert out.shape == (B, T, H)
    # bf16 MXU operands + approx EUP reciprocal -> loosened tolerance
    # (f32 accumulation is kept via preferred_element_type).
    assert jnp.allclose(out, ref, atol=5e-2, rtol=5e-2), "mismatch vs reference"

    print("KERNEL_OK")
</pallas_src>

<mosaic_0001>
module attributes {stable_mosaic.version = 11 : i64} {
  func.func @_head_kernel(%arg0: i32, %arg1: memref<16x32xbf16, #tpu.memory_space<vmem>>, %arg2: memref<32x384xbf16, #tpu.memory_space<vmem>>, %arg3: memref<2x8x128xf32, #tpu.memory_space<vmem>>) attributes {dimension_semantics = [#tpu.dimension_semantics<parallel>], iteration_bounds = array<i64: 1>, scalar_prefetch = 0 : i64, scratch_operands = 0 : i64, tpu.core_type = #tpu.core_type<tc>, window_params = [{transform_indices = @transform_0, window_bounds = array<i64: 16, 32>}, {pipeline_mode = #tpu.pipeline_mode<synchronous>, transform_indices = @transform_1, window_bounds = array<i64: 32, 384>}, {transform_indices = @transform_2, window_bounds = array<i64: 2, 8, 128>}]} {
    %c0 = arith.constant 0 : index
    %c0_0 = arith.constant 0 : index
    %0 = vector.load %arg1[%c0, %c0_0] : memref<16x32xbf16, #tpu.memory_space<vmem>>, vector<16x32xbf16>
    %c0_1 = arith.constant 0 : index
    %c0_2 = arith.constant 0 : index
    %1 = vector.load %arg2[%c0_1, %c0_2] : memref<32x384xbf16, #tpu.memory_space<vmem>>, vector<32x384xbf16>
    %cst = arith.constant dense<0.000000e+00> : vector<16x384xf32>
    %2 = tpu.matmul %0, %1, %cst {dimension_numbers = #tpu.dot_dimension_numbers<[1], [0], [0], [1], [0, 0, 1, 1], [], []>} : vector<16x32xbf16>, vector<32x384xbf16>, vector<16x384xf32> -> vector<16x384xf32>
    %3 = vector.shape_cast %2 : vector<16x384xf32> to vector<2x8x384xf32>
    %4 = vector.extract_strided_slice %3 {offsets = [0, 0, 0], sizes = [2, 8, 128], strides = [1, 1, 1]} : vector<2x8x384xf32> to vector<2x8x128xf32>
    %5 = vector.extract_strided_slice %3 {offsets = [0, 0, 128], sizes = [2, 8, 128], strides = [1, 1, 1]} : vector<2x8x384xf32> to vector<2x8x128xf32>
    %6 = vector.extract_strided_slice %3 {offsets = [0, 0, 256], sizes = [2, 8, 128], strides = [1, 1, 1]} : vector<2x8x384xf32> to vector<2x8x128xf32>
    "tpu.trace_start"() <{level = 10 : i32, message = "bqd,bkd->bqk"}> : () -> ()
    %cst_3 = arith.constant dense<0.000000e+00> : vector<2x8x8xf32>
    %7 = tpu.matmul %5, %4, %cst_3 {dimension_numbers = #tpu.dot_dimension_numbers<[2], [2], [1], [1], [0, 0, 0, 1, 1, 1], [0], [0]>} : vector<2x8x128xf32>, vector<2x8x128xf32>, vector<2x8x8xf32> -> vector<2x8x8xf32>
    "tpu.trace_stop"() : () -> ()
    %cst_4 = arith.constant 2.500000e-01 : f32
    %8 = vector.broadcast %cst_4 : f32 to vector<2x8x8xf32>
    %9 = arith.mulf %7, %8 : vector<2x8x8xf32>
    %10 = tpu.iota {dimensions = array<i32: 0>} : vector<8x8xi32>
    %11 = tpu.iota {dimensions = array<i32: 1>} : vector<8x8xi32>
    %12 = arith.cmpi sle, %11, %10 : vector<8x8xi32>
    %13 = vector.shape_cast %12 : vector<8x8xi1> to vector<1x8x8xi1>
    %cst_5 = arith.constant -1.000000e+30 : f32
    %14 = vector.shape_cast %13 : vector<1x8x8xi1> to vector<1x8x8xi1>
    %15 = vector.broadcast %14 : vector<1x8x8xi1> to vector<2x8x8xi1>
    %16 = vector.broadcast %cst_5 : f32 to vector<2x8x8xf32>
    %17 = arith.select %15, %9, %16 : vector<2x8x8xi1>, vector<2x8x8xf32>
    %cst_6 = arith.constant dense<0xFF800000> : vector<2x8xf32>
    %18 = vector.multi_reduction <maximumf>, %17, %cst_6 [2] : vector<2x8x8xf32> to vector<2x8xf32>
    %19 = vector.shape_cast %18 : vector<2x8xf32> to vector<2x8x1xf32>
    %20 = vector.broadcast %19 : vector<2x8x1xf32> to vector<2x8x8xf32>
    %21 = arith.subf %17, %20 : vector<2x8x8xf32>
    %22 = math.exp %21 : vector<2x8x8xf32>
    %cst_7 = arith.constant dense<0.000000e+00> : vector<2x8xf32>
    %23 = vector.multi_reduction <add>, %22, %cst_7 [2] : vector<2x8x8xf32> to vector<2x8xf32>
    %24 = vector.shape_cast %23 : vector<2x8xf32> to vector<2x8x1xf32>
    %25 = arith.truncf %22 : vector<2x8x8xf32> to vector<2x8x8xbf16>
    %26 = arith.truncf %6 : vector<2x8x128xf32> to vector<2x8x128xbf16>
    "tpu.trace_start"() <{level = 10 : i32, message = "bqk,bkd->bqd"}> : () -> ()
    %cst_8 = arith.constant dense<0.000000e+00> : vector<2x8x128xf32>
    %27 = tpu.matmul %25, %26, %cst_8 {dimension_numbers = #tpu.dot_dimension_numbers<[2], [1], [1], [2], [0, 0, 0, 1, 1, 2], [0], [0]>} : vector<2x8x8xbf16>, vector<2x8x128xbf16>, vector<2x8x128xf32> -> vector<2x8x128xf32>
    "tpu.trace_stop"() : () -> ()
    %28 = tpu.reciprocal %24 {approx = true} : vector<2x8x1xf32> -> vector<2x8x1xf32>
    %29 = vector.broadcast %28 : vector<2x8x1xf32> to vector<2x8x128xf32>
    %30 = arith.mulf %27, %29 : vector<2x8x128xf32>
    %c0_9 = arith.constant 0 : index
    %c0_10 = arith.constant 0 : index
    %c0_11 = arith.constant 0 : index
    %31 = vector.load %arg3[%c0_9, %c0_10, %c0_11] : memref<2x8x128xf32, #tpu.memory_space<vmem>>, vector<2x8x128xf32>
    tpu.vector_store %arg3[%c0_9, %c0_10, %c0_11], %30 {strides = array<i32>} : memref<2x8x128xf32, #tpu.memory_space<vmem>>, vector<2x8x128xf32>,
    return
  }
  func.func @transform_0(%arg0: i32) -> (i32, i32) {
    %c0_i32 = arith.constant 0 : i32
    %c0_i32_0 = arith.constant 0 : i32
    return %arg0, %c0_i32 : i32, i32
  }
  func.func @transform_1(%arg0: i32) -> (i32, i32) {
    %c0_i32 = arith.constant 0 : i32
    %c0_i32_0 = arith.constant 0 : i32
    %c0_i32_1 = arith.constant 0 : i32
    return %c0_i32, %c0_i32_0 : i32, i32
  }
  func.func @transform_2(%arg0: i32) -> (i32, i32, i32) {
    %c0_i32 = arith.constant 0 : i32
    %c0_i32_0 = arith.constant 0 : i32
    %c0_i32_1 = arith.constant 0 : i32
    return %arg0, %c0_i32, %c0_i32_0 : i32, i32, i32
  }
}

</mosaic_0001>

<bundles_post_ra>
// kernel: tpu_custom_call.1
= control target key start
LH: loop header
LB: loop body
LE: loop exit
PB: predicated region body
PF: predicated region fallthrough
CT: control target
= control target key end

     0   :  { %7 = vsyncpa [#allocation3], 0  ;;  %s663_s0 = inlined_call_operand.hbm [shape: bf16[16,32], index: 0, kind: input, shape index: {}]   ;;  %s664_s1 = inlined_call_operand.hbm [shape: bf16[32,384], index: 1, kind: input, shape index: {}]   ;;  %s665_s2 = inlined_call_operand.hbm [shape: f32[2,8,128], index: 2, kind: output, shape index: {}]  }
   0x1   :  { %8 = vsyncpa [#allocation6], 0 }
   0x2   :  { %9 = vsyncpa [#allocation4], 0  ;;  %s614_s9 = smov [#allocation2]  }
   0x3   :  { %s15_s10 = sshll.u32 %s614_s9, 4  ;;  %s16_s10 = int_to_ptr.vmem [resolvable:$true] %s15_s10 }
   0x4   :  { %s556_s11 = scalar_lea.vmem %s16_s10, 128  ;;  %p561_p1 = scmp.lt.s32.totalorder %s16_s10, %s16_s10 }
   0x5   :  { %p557_p0 = scmp.ne.s32.totalorder %s16_s10, %s556_s11  ;;  %p562_p2 = scmp.lt.s32.totalorder %s556_s11, %s556_s11 }
   0x7   :  { %p563_p3 = por %p562_p2, %p561_p1 }
   0x9   :  { %p564_p4 = pnand %p563_p3, %p557_p0 }
   0xb   :  { %567 = shalt.err (!%p564_p4)
}
   0xc   :  { %s615_s12 = smov 64   ;;  %s616_s13 = smov 4  }
   0xd   :  { %21 = dma.hbm_to_vmem [thread:$0]  %s663_s0, 128, %s16_s10, [#allocation3], %s615_s12, %s615_s12, %s616_s13  }
   0xe   :  { %s617_s16 = smov [#allocation5]  }
   0xf   :  { %s27_s17 = sshll.u32 %s617_s16, 4  ;;  %s28_s17 = int_to_ptr.vmem [resolvable:$true] %s27_s17 }
  0x10   :  { %s576_s18 = scalar_lea.vmem %s28_s17, 768  ;;  %p581_p6 = scmp.lt.s32.totalorder %s28_s17, %s28_s17 }
  0x11   :  { %p577_p5 = scmp.ne.s32.totalorder %s28_s17, %s576_s18  ;;  %p582_p7 = scmp.lt.s32.totalorder %s576_s18, %s576_s18 }
  0x13   :  { %p583_p8 = por %p582_p7, %p581_p6 }
  0x15   :  { %p584_p9 = pnand %p583_p8, %p577_p5 }
  0x17   :  { %587 = shalt.err (!%p584_p9)
}
  0x18   :  { %s618_s19 = smov 192   ;;  %s619_s20 = smov 12  }
  0x19   :  { %33 = dma.hbm_to_vmem [thread:$0]  %s664_s1, 768, %s28_s17, [#allocation6], %s618_s19, %s618_s19, %s619_s20  }
  0x1a   :  { %608 = dma.done.wait [#allocation3], 128  }
  0x1b   :  { %609 = vsyncadd [#allocation3], 4294967168 }
  0x1c   :  { %610 = dma.done.wait [#allocation6], 768  }
  0x1d   :  { %611 = vsyncadd [#allocation6], 4294966528  ;;  %v620_v0 = vmov 0   ;;  %v621_v1 = vmov 0.0   ;;  %vm622_vm0 = vmmov 0   ;;  %v537_v7 = vld [vmem:[#allocation2] sm:$0xff]   ;;  %v318_v21 = vlaneseq }
  0x1e   :  { %124 = vmatprep.mubr.bf16.mxu0 %v620_v0  ;;  %489 = vmatprep.subr.bf16.mxu1 %v621_v1  ;;  %v531_v2 = vld [vmem:[#allocation5 + $0x1c] ss:$12 sps:$4 sm:$0xff]   ;;  %v533_v3 = vld [vmem:[#allocation5 + $0x18] ss:$12 sps:$4 sm:$0xff]   ;;  %v536_v5 = vld [vmem:[#allocation5] ss:$12 sps:$4 sm:$0xff]  }
  0x1f   :  { %493 = vmatprep.mubr.msk.bf16.mxu1 %vm622_vm0, %v621_v1  ;;  %104 = vmatprep.subr.bf16.mxu0 %v531_v2  ;;  %v534_v4 = vld [vmem:[#allocation5 + $0x4] ss:$12 sps:$4 sm:$0xff]   ;;  %v538_v6 = vld [vmem:[#allocation5 + $0x20] ss:$12 sps:$4 sm:$0xff]   ;;  %v539_v8 = vld [vmem:[#allocation5 + $0x8] ss:$12 sps:$4 sm:$0xff]  }
  0x20   :  { %105 = vmatpush1.bf16.msra.mxu0 %v533_v3  ;;  %490 = vmatpush3.bf16.msra.mxu1 %v538_v6  ;;  %vm88_vm1 = vcmask 261120   ;;  %vm353_vm2 = vcmask 1043456   ;;  %v319_v22 = vshrl.u32 %v318_v21, 7  ;;  %v321_v23 = vand.u32 127, %v318_v21  ;;  %s623_s0 = smov [#allocation7]  }
  0x21   :  { %106 = vmatprep.subr.bf16.mxu0 %v534_v4  ;;  %491 = vmatprep.subr.bf16.mxu1 %v621_v1  ;;  %vm327_vm4 = vcmask 64512   ;;  %s454_s1 = sshll.u32 %s623_s0, 4  ;;  %s455_s1 = int_to_ptr.vmem [resolvable:$true] %s454_s1 }
  0x22   :  { %vm322_vm3 = vcmp.le.s32.totalorder %v321_v23, %v319_v22  ;;  %s588_s23 = scalar_lea.vmem %s455_s1, 256  ;;  %p593_p11 = scmp.lt.s32.totalorder %s455_s1, %s455_s1 }
  0x23   :  { %p589_p10 = scmp.ne.s32.totalorder %s455_s1, %s588_s23  ;;  %p594_p12 = scmp.lt.s32.totalorder %s588_s23, %s588_s23 }
  0x24   :  { %107 = vmatpush1.bf16.msra.mxu0 %v536_v5  ;;  %492 = vmatpush3.bf16.msra.mxu1 %v539_v8 }
  0x25   :  { %497 = vmatprep.subr.mxu0 %v621_v1  ;;  %502 = vmatprep.subr.mxu1 %v621_v1  ;;  %p595_p13 = por %p594_p12, %p593_p11 }
  0x27   :  { %474 = vmatmul.mubr.msk.bf16.vlgmr.msra.gmra.mxu0 %vm88_vm1, %v537_v7  ;;  %494 = vmatmul.mubr.msk.bf16.vlgmr.msra.gmra.mxu1 %vm88_vm1, %v537_v7  ;;  %p596_p0 = pnand %p595_p13, %p589_p10 }
  0x28   :  { %499 = vmatprep.mubr.msk.f32.mxu0 %vm622_vm0, %v621_v1  ;;  %504 = vmatprep.mubr.msk.f32.mxu1 %vm622_vm0, %v621_v1 }
  0xe7   :  { %v126_v9 = vpop.f32.mrf.mxu0  ;;  %v169_v11 = vpop.f32.mrf.mxu1 }
  0xe8   :  { %498 = vmatpush3.xpose.msra.mxu0 %v126_v9  ;;  %v348_v13 = vpack.c.bf16 %v169_v11, %v169_v11 }
  0xe9   :  { %v128_v10 = vpop.f32.mrf.mxu0  ;;  %507 = vmatprep.subr.bf16.mxu0 %v621_v1  ;;  %v495_v14 = vpop.f32.mrf.mxu1 }
  0xea   :  { %v355_v16 = vsel %vm353_vm2, %v348_v13, 0 }
  0xeb   :  { %v130_v12 = vpop.f32.mrf.mxu0  ;;  %500 = vmatmul.mubr.f32.vlgmr.msra.gmra.mxu0 %v128_v10  ;;  %v172_v17 = vpop.f32.mrf.mxu1 }
  0xec   :  { %503 = vmatpush3.xpose.msra.mxu1 %v130_v12  ;;  %509 = vmatprep.mubr.msk.bf16.mxu0 %vm622_vm0, %v621_v1  ;;  %v349_v18 = vpack.c.bf16 %v172_v17, %v172_v17 }
  0xed   :  { %v132_v15 = vpop.f32.mrf.mxu0  ;;  %513 = vmatprep.subr.bf16.mxu1 %v621_v1  ;;  %508 = vmatpush3.bf16.msra.mxu0 %v355_v16  ;;  %v496_v19 = vpop.f32.mrf.mxu1 }
  0xee   :  { %v401_v20 = vsel %vm353_vm2, %v349_v18, 0 }
  0xef   :  { %505 = vmatmul.mubr.f32.vlgmr.msra.gmra.mxu1 %v132_v15 }
  0xf0   :  { %515 = vmatprep.mubr.msk.bf16.mxu1 %vm622_vm0, %v621_v1  ;;  %514 = vmatpush3.bf16.msra.mxu1 %v401_v20 }
 0x1ab   :  { %v242_v24 = vpop.f32.mrf.mxu0 }
 0x1ac   :  { %v316_v25 = vmul.f32 0.25, %v242_v24 }
 0x1ad   :  { %v501_v26 = vpop.f32.mrf.mxu0 }
 0x1ae   :  { %v325_v27 = vsel %vm322_vm3, %v316_v25, -1e+30 }
 0x1af   :  { %v312_v28 = vpop.f32.mrf.mxu1  ;;  %v328_v29 = vsel %vm327_vm4, %v325_v27, -inf }
 0x1b0   :  { %v317_v30 = vmul.f32 0.25, %v312_v28  ;;  %329 = vmax.xlane.f32.xlu0 %v328_v29 }
 0x1b1   :  { %v506_v31 = vpop.f32.mrf.mxu1 }
 0x1b2   :  { %v326_v32 = vsel %vm322_vm3, %v317_v30, -1e+30 }
 0x1b3   :  { %v331_v33 = vsel %vm327_vm4, %v326_v32, -inf }
 0x1b4   :  { %332 = vmax.xlane.f32.xlu0 %v331_v33 }
 0x239   :  { %v330_v34 = vpop.xlane.xlu0 %329 }
 0x23a   :  { %v334_v35 = vsub.f32 %v325_v27, %v330_v34 }
 0x23c   :  { %v336_v36 = vmul.f32 1.442695, %v334_v35 }
 0x23d   :  { %v333_v37 = vpop.xlane.xlu0 %332 }
 0x23e   :  { %540 = vpow2.f32 %v336_v36  ;;  %v335_v38 = vsub.f32 %v326_v32, %v333_v37 }
 0x240   :  { %v338_v39 = vmul.f32 1.442695, %v335_v38 }
 0x242   :  { %542 = vpow2.f32 %v338_v39 }
 0x24b   :  { %v541_v40 = vpop.eup %540 }
 0x24c   :  { %v340_v41 = vsel %vm327_vm4, %v541_v40, 0.0  ;;  %v346_v42 = vpack.c.bf16 %v541_v40, %v541_v40 }
 0x24d   :  { %341 = vadd.xlane.f32.xlu1 %v340_v41 }
 0x24e   :  { %510 = vmatmul.mubr.msk.bf16.vlgmr.msra.gmra.mxu0 %vm327_vm4, %v346_v42 }
 0x24f   :  { %v543_v43 = vpop.eup %542 }
 0x250   :  { %v343_v44 = vsel %vm327_vm4, %v543_v43, 0.0  ;;  %v347_v45 = vpack.c.bf16 %v543_v43, %v543_v43 }
 0x251   :  { %344 = vadd.xlane.f32.xlu1 %v343_v44 }
 0x252   :  { %516 = vmatmul.mubr.msk.bf16.vlgmr.msra.gmra.mxu1 %vm327_vm4, %v347_v45 }
 0x2d6   :  { %v342_v46 = vpop.xlane.xlu1 %341 }
 0x2d7   :  { %544 = vrcp.f32 %v342_v46 }
 0x2da   :  { %v345_v47 = vpop.xlane.xlu1 %344 }
 0x2db   :  { %546 = vrcp.f32 %v345_v47 }
 0x2e4   :  { %v545_v48 = vpop.eup %544 }
 0x2e8   :  { %v547_v52 = vpop.eup %546 }
 0x30e   :  { %v391_v49 = vpop.f32.mrf.mxu0 }
 0x30f   :  { %v445_v50 = vmul.f32 %v545_v48, %v391_v49 }
 0x310   :  { %v511_v51 = vpop.f32.mrf.mxu0 }
 0x311   :  { %447 = vst [vmem:[#allocation7] sm:$0xff] %v445_v50 }
 0x312   :  { %v394_v53 = vpop.f32.mrf.mxu0  ;;  %v437_v54 = vpop.f32.mrf.mxu1 }
 0x313   :  { %v446_v55 = vmul.f32 %v547_v52, %v437_v54 }
 0x314   :  { %v512_v56 = vpop.f32.mrf.mxu0  ;;  %v517_v57 = vpop.f32.mrf.mxu1 }
 0x315   :  { %448 = vst [vmem:[#allocation7 + $0x8] sm:$0xff] %v446_v55 }
 0x316   :  { %v440_v58 = vpop.f32.mrf.mxu1 }
 0x317   :  { %599 = shalt.err (!%p596_p0)
}
 0x318   :  { %s624_s24 = smov 128   ;;  %s625_s25 = smov 8   ;;  %v518_v59 = vpop.f32.mrf.mxu1 }
 0x319   :  { %460 = dma.vmem_to_hbm [thread:$0]  %s455_s1, 256, %s665_s2, [#allocation4], %s624_s24, %s624_s24, %s625_s25  }
 0x31a   :  { %612 = dma.done.wait [#allocation4], 256  }
 0x31b   :  { %613 = vsyncadd [#allocation4], 4294967040 }
 0x31c   :  { %464 = vsyncpa [#allocation3], 1 }
 0x31d   :  { %465 = vsyncpa [#allocation6], 1 }
 0x31e   :  { %466 = vsyncpa [#allocation4], 1 }

</bundles_post_ra>
